<compile_context>
chip_gen: v6e
topology: v6e:2x2x1
jax: 0.10.0
libtpu: 0.0.40
codegen_flags: <defaults>
</compile_context>

<pallas_src>
import math
import jax
import jax.numpy as jnp
from jax.experimental import pallas as pl
from jax.experimental.pallas import tpu as pltpu

# ---------------- model dims (small, deterministic) ----------------
HIDDEN = 32
FFN_DIM = 4 * HIDDEN          # 128
BATCH = 2
SEQ = 8
M = BATCH * SEQ               # 16 rows processed in one shot
OUT_PAD = 128                 # lane-dense padded output width (HIDDEN -> 128)


# ---------------- Pallas kernel: whole FFN in one invocation ----------------
def ffn_kernel(x_ref, w_ug_ref, b_ug_ref, w_down_ref, b_down_ref, out_ref):
    x = x_ref[...]                                                    # (M, H)

    # fused up|gate projection: one 256-lane-wide MXU matmul + bias
    ug = jnp.dot(x, w_ug_ref[...], preferred_element_type=jnp.float32) \
        + b_ug_ref[...]                                               # (M, 2*FFN)
    up = ug[:, :FFN_DIM]            # aligned 128-lane slice
    gate = ug[:, FFN_DIM:]          # aligned 128-lane slice

    # SiLU(up) * gate   (VPU muls + EUP sigmoid, lane-dense f32 vregs)
    hidden = up * jax.nn.sigmoid(up) * gate                           # (M, FFN)

    # down projection into a lane-dense padded slab (cols >= HIDDEN are zeros)
    out_ref[...] = (
        jnp.dot(hidden, w_down_ref[...], preferred_element_type=jnp.float32)
        + b_down_ref[...]
    )                                                                 # (M, OUT_PAD)


def ffn_pallas(x, params):
    """x: (B, S, HIDDEN) -> (B, S, HIDDEN)."""
    B, S, H = x.shape
    x2d = x.reshape(B * S, H)

    # ---- wrapper-side weight fusion / padding (pure layout plumbing) ----
    w_ug = jnp.concatenate([params["w_up"], params["w_gate"]], axis=1)   # (H, 2*FFN)
    b_ug = jnp.concatenate([params["b_up"], params["b_gate"]], axis=1)   # (1, 2*FFN)
    w_down_pad = (
        jnp.zeros((FFN_DIM, OUT_PAD), jnp.float32).at[:, :H].set(params["w_down"])
    )
    b_down_pad = jnp.zeros((1, OUT_PAD), jnp.float32).at[:, :H].set(params["b_down"])

    vmem_spec = pl.BlockSpec(memory_space=pltpu.MemorySpace.VMEM)
    out_pad = pl.pallas_call(
        ffn_kernel,
        out_shape=jax.ShapeDtypeStruct((B * S, OUT_PAD), jnp.float32),
        in_specs=[vmem_spec] * 5,
        out_specs=vmem_spec,
    )(x2d, w_ug, b_ug, w_down_pad, b_down_pad)

    return out_pad[:, :H].reshape(B, S, H)


# ---------------- pure-JAX reference (mirrors the PyTorch FFN) ----------------
def reference_ffn(x, params):
    def linear(z, w, b):
        return z @ w + b
    up = linear(x, params["w_up"], params["b_up"])
    gate = linear(x, params["w_gate"], params["b_gate"])
    return linear(jax.nn.silu(up) * gate, params["w_down"], params["b_down"])


# ---------------- deterministic parameter construction (nn.Linear-like init) --
def make_params(key):
    def lin(k, fan_in, fan_out):
        k1, k2 = jax.random.split(k)
        bound = 1.0 / math.sqrt(fan_in)
        w = jax.random.uniform(k1, (fan_in, fan_out), jnp.float32, -bound, bound)
        b = jax.random.uniform(k2, (1, fan_out), jnp.float32, -bound, bound)
        return w, b

    ks = jax.random.split(key, 3)
    p = {}
    p["w_up"], p["b_up"] = lin(ks[0], HIDDEN, FFN_DIM)
    p["w_gate"], p["b_gate"] = lin(ks[1], HIDDEN, FFN_DIM)
    p["w_down"], p["b_down"] = lin(ks[2], FFN_DIM, HIDDEN)
    return p


if __name__ == "__main__":
    key = jax.random.PRNGKey(0)
    kx, kp = jax.random.split(key)
    x = jax.random.normal(kx, (BATCH, SEQ, HIDDEN), jnp.float32)
    params = make_params(kp)

    out = ffn_pallas(x, params)
    out = jax.block_until_ready(out)

    ref = reference_ffn(x, params)
    assert out.shape == (BATCH, SEQ, HIDDEN)
    assert jnp.allclose(out, ref, atol=1e-3, rtol=1e-3), "mismatch vs reference"

    print("KERNEL_OK")
</pallas_src>

<mosaic_0001>
module attributes {stable_mosaic.version = 11 : i64} {
  func.func @ffn_kernel(%arg0: memref<16x32xf32, #tpu.memory_space<vmem>>, %arg1: memref<32x256xf32, #tpu.memory_space<vmem>>, %arg2: memref<1x256xf32, #tpu.memory_space<vmem>>, %arg3: memref<128x128xf32, #tpu.memory_space<vmem>>, %arg4: memref<1x128xf32, #tpu.memory_space<vmem>>, %arg5: memref<16x128xf32, #tpu.memory_space<vmem>>) attributes {dimension_semantics = [], scalar_prefetch = 0 : i64, scratch_operands = 0 : i64, tpu.core_type = #tpu.core_type<tc>} {
    %c0 = arith.constant 0 : index
    %c0_0 = arith.constant 0 : index
    %0 = vector.load %arg0[%c0, %c0_0] : memref<16x32xf32, #tpu.memory_space<vmem>>, vector<16x32xf32>
    %c0_1 = arith.constant 0 : index
    %c0_2 = arith.constant 0 : index
    %1 = vector.load %arg1[%c0_1, %c0_2] : memref<32x256xf32, #tpu.memory_space<vmem>>, vector<32x256xf32>
    %cst = arith.constant dense<0.000000e+00> : vector<16x256xf32>
    %2 = tpu.matmul %0, %1, %cst {dimension_numbers = #tpu.dot_dimension_numbers<[1], [0], [0], [1], [0, 0, 1, 1], [], []>} : vector<16x32xf32>, vector<32x256xf32>, vector<16x256xf32> -> vector<16x256xf32>
    %c0_3 = arith.constant 0 : index
    %c0_4 = arith.constant 0 : index
    %3 = vector.load %arg2[%c0_3, %c0_4] : memref<1x256xf32, #tpu.memory_space<vmem>>, vector<1x256xf32>
    %4 = vector.broadcast %3 : vector<1x256xf32> to vector<16x256xf32>
    %5 = arith.addf %2, %4 : vector<16x256xf32>
    %6 = vector.extract_strided_slice %5 {offsets = [0, 0], sizes = [16, 128], strides = [1, 1]} : vector<16x256xf32> to vector<16x128xf32>
    %7 = vector.extract_strided_slice %5 {offsets = [0, 128], sizes = [16, 128], strides = [1, 1]} : vector<16x256xf32> to vector<16x128xf32>
    %8 = arith.negf %6 : vector<16x128xf32>
    %9 = math.exp %8 : vector<16x128xf32>
    %cst_5 = arith.constant 1.000000e+00 : f32
    %10 = vector.broadcast %cst_5 : f32 to vector<16x128xf32>
    %11 = arith.addf %10, %9 : vector<16x128xf32>
    %12 = arith.divf %10, %11 : vector<16x128xf32>
    %13 = arith.mulf %6, %12 : vector<16x128xf32>
    %14 = arith.mulf %13, %7 : vector<16x128xf32>
    %c0_6 = arith.constant 0 : index
    %c0_7 = arith.constant 0 : index
    %15 = vector.load %arg3[%c0_6, %c0_7] : memref<128x128xf32, #tpu.memory_space<vmem>>, vector<128x128xf32>
    %cst_8 = arith.constant dense<0.000000e+00> : vector<16x128xf32>
    %16 = tpu.matmul %14, %15, %cst_8 {dimension_numbers = #tpu.dot_dimension_numbers<[1], [0], [0], [1], [0, 0, 1, 1], [], []>} : vector<16x128xf32>, vector<128x128xf32>, vector<16x128xf32> -> vector<16x128xf32>
    %c0_9 = arith.constant 0 : index
    %c0_10 = arith.constant 0 : index
    %17 = vector.load %arg4[%c0_9, %c0_10] : memref<1x128xf32, #tpu.memory_space<vmem>>, vector<1x128xf32>
    %18 = vector.broadcast %17 : vector<1x128xf32> to vector<16x128xf32>
    %19 = arith.addf %16, %18 : vector<16x128xf32>
    %c0_11 = arith.constant 0 : index
    %c0_12 = arith.constant 0 : index
    %20 = vector.load %arg5[%c0_11, %c0_12] : memref<16x128xf32, #tpu.memory_space<vmem>>, vector<16x128xf32>
    tpu.vector_store %arg5[%c0_11, %c0_12], %19 {strides = array<i32>} : memref<16x128xf32, #tpu.memory_space<vmem>>, vector<16x128xf32>,
    return
  }
}

</mosaic_0001>

<bundles_post_ra>
// kernel: tpu_custom_call.1
= control target key start
LH: loop header
LB: loop body
LE: loop exit
PB: predicated region body
PF: predicated region fallthrough
CT: control target
= control target key end

     0   :  { %10 = vsyncpa [#allocation3], 0  ;;  %s529_s0 = inlined_call_operand.hbm [shape: f32[16,32], index: 0, kind: input, shape index: {}]   ;;  %s530_s1 = inlined_call_operand.hbm [shape: f32[32,256], index: 1, kind: input, shape index: {}]   ;;  %s531_s2 = inlined_call_operand.vmem [shape: f32[1,256], index: 2, kind: input, shape index: {}]   ;;  %s532_s3 = inlined_call_operand.hbm [shape: f32[128,128], index: 3, kind: input, shape index: {}]   ;;  %s533_s4 = inlined_call_operand.vmem [shape: f32[1,128], index: 4, kind: input, shape index: {}]   ;;  %s534_s5 = inlined_call_operand.hbm [shape: f32[16,128], index: 5, kind: output, shape index: {}]  }
   0x1   :  { %11 = vsyncpa [#allocation6], 0 }
   0x2   :  { %12 = vsyncpa [#allocation4], 0  ;;  %s463_s18 = smov [#allocation5]  }
   0x3   :  { %s30_s19 = sshll.u32 %s463_s18, 4  ;;  %s31_s19 = int_to_ptr.vmem [resolvable:$true] %s30_s19 }
   0x4   :  { %s385_s20 = scalar_lea.vmem %s31_s19, 1024  ;;  %p390_p1 = scmp.lt.s32.totalorder %s31_s19, %s31_s19 }
   0x5   :  { %p386_p0 = scmp.ne.s32.totalorder %s31_s19, %s385_s20  ;;  %p391_p2 = scmp.lt.s32.totalorder %s385_s20, %s385_s20 }
   0x7   :  { %p392_p3 = por %p391_p2, %p390_p1 }
   0x9   :  { %p393_p4 = pnand %p392_p3, %p386_p0 }
   0xb   :  { %396 = shalt.err (!%p393_p4)
}
   0xc   :  { %s464_s21 = smov 256   ;;  %s465_s22 = smov 16  }
   0xd   :  { %36 = dma.hbm_to_vmem [thread:$0]  %s530_s1, 1024, %s31_s19, [#allocation6], %s464_s21, %s464_s21, %s465_s22  }
   0xe   :  { %s466_s25 = smov [#allocation2]  }
   0xf   :  { %s18_s26 = sshll.u32 %s466_s25, 4  ;;  %s19_s26 = int_to_ptr.vmem [resolvable:$true] %s18_s26 }
  0x10   :  { %s405_s27 = scalar_lea.vmem %s19_s26, 256  ;;  %p410_p6 = scmp.lt.s32.totalorder %s19_s26, %s19_s26 }
  0x11   :  { %p406_p5 = scmp.ne.s32.totalorder %s19_s26, %s405_s27  ;;  %p411_p7 = scmp.lt.s32.totalorder %s405_s27, %s405_s27 }
  0x13   :  { %p412_p8 = por %p411_p7, %p410_p6 }
  0x15   :  { %p413_p9 = pnand %p412_p8, %p406_p5 }
  0x17   :  { %416 = shalt.err (!%p413_p9)
}
  0x18   :  { %s467_s28 = smov 128   ;;  %s468_s29 = smov 8  }
  0x19   :  { %24 = dma.hbm_to_vmem [thread:$0]  %s529_s0, 256, %s19_s26, [#allocation3], %s467_s28, %s467_s28, %s468_s29  }
  0x1a   :  { %s469_s1 = smov [#allocation7]  }
  0x1b   :  { %s44_s7 = sshll.u32 %s469_s1, 4  ;;  %s45_s7 = int_to_ptr.vmem [resolvable:$true] %s44_s7 }
  0x1c   :  { %s425_s8 = scalar_lea.vmem %s45_s7, 2048  ;;  %p430_p11 = scmp.lt.s32.totalorder %s45_s7, %s45_s7 }
  0x1d   :  { %p426_p10 = scmp.ne.s32.totalorder %s45_s7, %s425_s8  ;;  %p431_p12 = scmp.lt.s32.totalorder %s425_s8, %s425_s8 }
  0x1f   :  { %p432_p13 = por %p431_p12, %p430_p11 }
  0x21   :  { %p433_p0 = pnand %p432_p13, %p426_p10 }
  0x23   :  { %436 = shalt.err (!%p433_p0)
}
  0x24   :  { %50 = dma.hbm_to_vmem [thread:$0]  %s532_s3, 2048, %s45_s7, [#allocation6], %s467_s28, %s467_s28, %s468_s29  }
  0x25   :  { %457 = dma.done.wait [#allocation3], 256  }
  0x26   :  { %458 = vsyncadd [#allocation3], 4294967040 }
  0x27   :  { %459 = dma.done.wait [#allocation6], 3072  }
  0x28   :  { %460 = vsyncadd [#allocation6], 4294964224  ;;  %v470_v0 = vmov 0.0   ;;  %v71_v1 = vld [vmem:[#allocation5 + $0x38] sm:$0xff]  ;;  %v70_v2 = vld [vmem:[#allocation5 + $0x30] sm:$0xff]  ;;  %vm84_vm0 = vcmask 261120   ;;  %v74_v27 = vlaneseq }
  0x29   :  { %155 = vmatprep.mubr.f32.mxu0 %v470_v0  ;;  %v69_v3 = vld [vmem:[#allocation5 + $0x28] sm:$0xff]  ;;  %115 = vmatprep.subr.mxu0 %v71_v1  ;;  %v68_v4 = vld [vmem:[#allocation5 + $0x20] sm:$0xff]  ;;  %v67_v5 = vld [vmem:[#allocation5 + $0x18] sm:$0xff]  ;;  %s471_s12 = smov [#allocation8]  }
  0x2a   :  { %116 = vmatpush1.msra.mxu0 %v70_v2  ;;  %v66_v6 = vld [vmem:[#allocation5 + $0x10] sm:$0xff]  ;;  %v65_v7 = vld [vmem:[#allocation5 + $0x8] sm:$0xff]  ;;  %v64_v8 = vld [vmem:[#allocation5] sm:$0xff]  ;;  %v75_v28 = vshrl.u32 %v74_v27, 7  ;;  %s289_s13 = sshll.u32 %s471_s12, 4  ;;  %s290_s13 = int_to_ptr.vmem [resolvable:$true] %s289_s13 }
  0x2b   :  { %117 = vmatprep.subr.mxu0 %v69_v3  ;;  %v62_v9 = vld [vmem:[#allocation2] sm:$0xff]  ;;  %v63_v10 = vld [vmem:[#allocation2 + $0x8] sm:$0xff]  ;;  %v197_v13 = vld [vmem:[#allocation7 + $0x68] sm:$0xff]  ;;  %s437_s14 = scalar_lea.vmem %s290_s13, 256  ;;  %p442_p2 = scmp.lt.s32.totalorder %s290_s13, %s290_s13 }
  0x2c   :  { %118 = vmatpush1.msra.mxu0 %v68_v4  ;;  %v199_v11 = vld [vmem:[#allocation7 + $0x78] sm:$0xff]  ;;  %v198_v12 = vld [vmem:[#allocation7 + $0x70] sm:$0xff]  ;;  %v196_v14 = vld [vmem:[#allocation7 + $0x60] sm:$0xff]  ;;  %v76_v29 = vsub.s32 0, %v75_v28  ;;  %v80_v43 = vsub.s32 1, %v75_v28  ;;  %p438_p1 = scmp.ne.s32.totalorder %s290_s13, %s437_s14  ;;  %p443_p3 = scmp.lt.s32.totalorder %s437_s14, %s437_s14 }
  0x2d   :  { %119 = vmatprep.subr.mxu0 %v67_v5  ;;  %325 = vmatprep.subr.mxu1 %v199_v11  ;;  %v195_v15 = vld [vmem:[#allocation7 + $0x58] sm:$0xff]  ;;  %v194_v16 = vld [vmem:[#allocation7 + $0x50] sm:$0xff]  ;;  %v193_v17 = vld [vmem:[#allocation7 + $0x48] sm:$0xff] }
  0x2e   :  { %120 = vmatpush1.msra.mxu0 %v66_v6  ;;  %326 = vmatpush3.msra.mxu1 %v199_v11  ;;  %v192_v18 = vld [vmem:[#allocation7 + $0x40] sm:$0xff]  ;;  %v191_v19 = vld [vmem:[#allocation7 + $0x38] sm:$0xff]  ;;  %v190_v20 = vld [vmem:[#allocation7 + $0x30] sm:$0xff]  ;;  %p444_p4 = por %p443_p3, %p442_p2 }
  0x2f   :  { %121 = vmatprep.subr.mxu0 %v65_v7  ;;  %327 = vmatprep.subr.mxu1 %v198_v12  ;;  %v189_v21 = vld [vmem:[#allocation7 + $0x28] sm:$0xff]  ;;  %v188_v22 = vld [vmem:[#allocation7 + $0x20] sm:$0xff]  ;;  %v187_v23 = vld [vmem:[#allocation7 + $0x18] sm:$0xff] }
  0x30   :  { %122 = vmatpush1.msra.mxu0 %v64_v8  ;;  %328 = vmatpush3.msra.mxu1 %v198_v12  ;;  %v186_v24 = vld [vmem:[#allocation7 + $0x10] sm:$0xff]  ;;  %v185_v25 = vld [vmem:[#allocation7 + $0x8] sm:$0xff]  ;;  %v184_v26 = vld [vmem:[#allocation7] sm:$0xff]  ;;  %p445_p5 = pnand %p444_p4, %p438_p1 }
  0x31   :  { %302 = vmatmul.mubr.msk.f32.vlgmr.msra.gmra.mxu0 %vm84_vm0, %v62_v9  ;;  %329 = vmatprep.subr.mxu1 %v197_v13  ;;  %v72_v30 = vld [vmem:[%s531_s2] sm:$0x3] }
  0x32   :  { %161 = vmatprep.mubr.f32.mxu0 %v470_v0  ;;  %330 = vmatpush3.msra.mxu1 %v197_v13  ;;  %v77_v31 = vrot.slane %v72_v30, %v76_v29  ;;  %v81_v44 = vrot.slane %v72_v30, %v80_v43  ;;  %v306_v54 = vld [vmem:[%s533_s4] ss:$0 sm:$0xff] }
  0x33   :  { %331 = vmatprep.subr.mxu1 %v196_v14 }
  0x34   :  { %332 = vmatpush3.msra.mxu1 %v196_v14 }
  0x35   :  { %303 = vmatmul.mubr.msk.f32.gmra.mxu0 %vm84_vm0, %v63_v10  ;;  %333 = vmatprep.subr.mxu1 %v195_v15 }
  0x36   :  { %334 = vmatpush3.msra.mxu1 %v195_v15 }
  0x37   :  { %335 = vmatprep.subr.mxu1 %v194_v16 }
  0x38   :  { %336 = vmatpush3.msra.mxu1 %v194_v16 }
  0x39   :  { %337 = vmatprep.subr.mxu1 %v193_v17 }
  0x3a   :  { %338 = vmatpush3.msra.mxu1 %v193_v17 }
  0x3b   :  { %339 = vmatprep.subr.mxu1 %v192_v18 }
  0x3c   :  { %340 = vmatpush3.msra.mxu1 %v192_v18 }
  0x3d   :  { %341 = vmatprep.subr.mxu1 %v191_v19 }
  0x3e   :  { %342 = vmatpush3.msra.mxu1 %v191_v19 }
  0x3f   :  { %343 = vmatprep.subr.mxu1 %v190_v20 }
  0x40   :  { %344 = vmatpush3.msra.mxu1 %v190_v20 }
  0x41   :  { %345 = vmatprep.subr.mxu1 %v189_v21 }
  0x42   :  { %346 = vmatpush3.msra.mxu1 %v189_v21 }
  0x43   :  { %347 = vmatprep.subr.mxu1 %v188_v22 }
  0x44   :  { %348 = vmatpush3.msra.mxu1 %v188_v22 }
  0x45   :  { %349 = vmatprep.subr.mxu1 %v187_v23 }
  0x46   :  { %350 = vmatpush3.msra.mxu1 %v187_v23 }
  0x47   :  { %351 = vmatprep.subr.mxu1 %v186_v24 }
  0x48   :  { %352 = vmatpush3.msra.mxu1 %v186_v24 }
  0x49   :  { %353 = vmatprep.subr.mxu1 %v185_v25 }
  0x4a   :  { %354 = vmatpush3.msra.mxu1 %v185_v25 }
  0x4b   :  { %355 = vmatprep.subr.mxu1 %v184_v26 }
  0x4c   :  { %356 = vmatpush3.msra.mxu1 %v184_v26 }
  0xf1   :  { %v157_v32 = vpop.f32.mrf.mxu0 }
  0xf2   :  { %v158_v33 = vadd.f32 %v157_v32, %v77_v31 }
  0xf3   :  { %v159_v34 = vpop.f32.mrf.mxu0 }
  0xf4   :  { %v304_v35 = vmul.f32 -1.442695, %v158_v33  ;;  %v160_v46 = vadd.f32 %v159_v34, %v81_v44 }
  0xf5   :  { %v163_v36 = vpop.f32.mrf.mxu0 }
  0xf6   :  { %369 = vpow2.f32 %v304_v35  ;;  %v164_v37 = vadd.f32 %v163_v36, %v77_v31 }
  0xf7   :  { %v165_v48 = vpop.f32.mrf.mxu0 }
  0xf8   :  { %v305_v38 = vmul.f32 -1.442695, %v164_v37  ;;  %v166_v52 = vadd.f32 %v165_v48, %v81_v44 }
  0xfa   :  { %371 = vpow2.f32 %v305_v38 }
 0x103   :  { %v370_v39 = vpop.eup %369 }
 0x104   :  { %v174_v40 = vadd.f32 1.0, %v370_v39 }
 0x106   :  { %373 = vrcp.f32 %v174_v40 }
 0x107   :  { %v372_v41 = vpop.eup %371 }
 0x108   :  { %v175_v42 = vadd.f32 1.0, %v372_v41 }
 0x10a   :  { %375 = vrcp.f32 %v175_v42 }
 0x113   :  { %v374_v45 = vpop.eup %373 }
 0x114   :  { %v180_v47 = vmul.f32 %v374_v45, %v158_v33 }
 0x116   :  { %v182_v49 = vmul.f32 %v180_v47, %v160_v46 }
 0x117   :  { %v376_v50 = vpop.eup %375 }
 0x118   :  { %v181_v51 = vmul.f32 %v376_v50, %v164_v37  ;;  %357 = vmatprep.mubr.f32.mxu1 %v182_v49 }
 0x11a   :  { %v183_v53 = vmul.f32 %v181_v51, %v166_v52 }
 0x11c   :  { %358 = vmatmul.mubr.f32.vlgmr.msra.gmra.mxu1 %v183_v53 }
 0x1dc   :  { %v359_v55 = vpop.f32.mrf.mxu1 }
 0x1dd   :  { %v279_v56 = vadd.f32 %v359_v55, %v306_v54 }
 0x1de   :  { %v273_v57 = vpop.f32.mrf.mxu1 }
 0x1df   :  { %283 = vst [vmem:[#allocation8 + $0x8] sm:$0xff] %v279_v56  ;;  %v274_v58 = vadd.f32 %v306_v54, %v273_v57 }
 0x1e1   :  { %282 = vst [vmem:[#allocation8] sm:$0xff] %v274_v58 }
 0x1e2   :  { %448 = shalt.err (!%p445_p5)
}
 0x1e3   :  { %295 = dma.vmem_to_hbm [thread:$0]  %s290_s13, 256, %s534_s5, [#allocation4], %s467_s28, %s467_s28, %s468_s29  }
 0x1e4   :  { %461 = dma.done.wait [#allocation4], 256  }
 0x1e5   :  { %462 = vsyncadd [#allocation4], 4294967040 }
 0x1e6   :  { %299 = vsyncpa [#allocation3], 1 }
 0x1e7   :  { %300 = vsyncpa [#allocation6], 1 }
 0x1e8   :  { %301 = vsyncpa [#allocation4], 1 }

</bundles_post_ra>
